<compile_context>
chip_gen: v7x
topology: tpu7x:2x2x1
jax: 0.10.0
libtpu: 0.0.40
codegen_flags: <defaults>
</compile_context>

<pallas_src>
import functools

import jax
import jax.numpy as jnp
from jax import lax
from jax.experimental import pallas as pl
from jax.experimental.pallas import tpu as pltpu

_VMEM_LIMIT = 40 * 1024 * 1024         # scoped-VMEM limit: headroom under v7x's 64 MiB physical
_FUSED_VMEM_BUDGET = 24 * 1024 * 1024  # per-batch working-set gate for the fused path
_TILE_VMEM_BUDGET = 20 * 1024 * 1024   # per-tile working-set budget for the two-pass path


# ---------------------------------------------------------------------------
# Fused single-kernel path (feat resident in VMEM; grid = (B,))
# ---------------------------------------------------------------------------
def _fused_kernel(gamma_ref, fsp_ref, fcp_ref, wc_ref, shift_ref, wvko_ref,
                  bvko_ref, wq_ref, bq_ref, out_ref, fcat_scr,
                  *, c_out, ck, voff, n_pix, eps, needs_mask):
    f32 = jnp.float32
    c1 = fsp_ref.shape[1]

    # Merged concat-conv (BN scale folded into wc): build fcat in VMEM scratch.
    fcat_scr[:c1, :] = fsp_ref[0]
    fcat_scr[c1:, :] = fcp_ref[0]
    conv = jnp.dot(wc_ref[...], fcat_scr[...], preferred_element_type=f32)
    feat = jnp.maximum(conv + shift_ref[...], 0.0)                 # (C, Np) f32
    feat_bf = feat.astype(jnp.bfloat16)

    # Stacked [K; 1; pad; V; 1] projection (bf16 MXU operands, f32 accumulate).
    vk = jnp.dot(wvko_ref[...], feat_bf, preferred_element_type=f32) + bvko_ref[...]
    if needs_mask:
        lane = lax.broadcasted_iota(jnp.int32, (1, vk.shape[1]), 1)
        vk = vk * (lane < n_pix).astype(f32)

    kq = vk[:ck + 1]                              # [K; 1]      (Ck+1, Np)
    v_aug = vk[voff:voff + c_out + 1]             # [V; 1]      (C+1,  Np)

    # l2-normalize K per spatial position (faithful: no eps, like the module);
    # ones row stays untouched (or stays zero on padded lanes).
    inv_k = lax.rsqrt(jnp.sum(kq[:ck] * kq[:ck], axis=0, keepdims=True))
    if needs_mask:
        inv_k = jnp.where(lane < n_pix, inv_k, 0.0)
    row_k = lax.broadcasted_iota(jnp.int32, kq.shape, 0)
    kn_aug = kq * jnp.where(row_k < ck, inv_k, 1.0)

    # Global stats in one matmul: mat[:Ck,:C]=Kn@V^T, mat[:Ck,C]=k_sum,
    # mat[Ck,:C]=value_sum, mat[Ck,C]=N.
    mat = lax.dot_general(kn_aug, v_aug, (((1,), (1,)), ((), ())),
                          preferred_element_type=f32)              # (Ck+1, C+1)
    rowm = lax.broadcasted_iota(jnp.int32, mat.shape, 0)
    colm = lax.broadcasted_iota(jnp.int32, mat.shape, 1)
    mat = mat + jnp.where((rowm < ck) & (colm == c_out), eps, 0.0)  # fold eps into k_sum

    # Q projection + normalization.
    q = jnp.dot(wq_ref[...], feat_bf, preferred_element_type=f32) + bq_ref[...]
    inv_q = lax.rsqrt(jnp.sum(q[:ck] * q[:ck], axis=0, keepdims=True))
    row_q = lax.broadcasted_iota(jnp.int32, q.shape, 0)
    qn_aug = q * jnp.where(row_q < ck, inv_q, 1.0)                 # (Ck+1, Np)

    # One apply matmul: rows 0..C-1 = matrix_sum, row C = tailor denominator.
    msum = lax.dot_general(mat, qn_aug, (((0,), (0,)), ((), ())),
                           preferred_element_type=f32)             # (C+1, Np)
    tail = gamma_ref[0, 0] * pl.reciprocal(msum[c_out:], approx=True)
    atten = msum[:c_out] * tail
    out_ref[0] = (feat * atten + feat).astype(out_ref.dtype)


# ---------------------------------------------------------------------------
# Two-pass fallback (feat round-trips HBM as bfloat16)
# ---------------------------------------------------------------------------
def _stats_kernel(fsp_ref, fcp_ref, wc_ref, shift_ref, wvko_ref, bvko_ref,
                  feat_ref, mat_ref, fcat_scr,
                  *, c_out, ck, voff, n_pix, block_n, needs_mask):
    f32 = jnp.float32
    n_idx = pl.program_id(1)
    c1 = fsp_ref.shape[1]

    @pl.when(n_idx == 0)
    def _():
        mat_ref[...] = jnp.zeros_like(mat_ref)

    fcat_scr[:c1, :] = fsp_ref[0]
    fcat_scr[c1:, :] = fcp_ref[0]
    conv = jnp.dot(wc_ref[...], fcat_scr[...], preferred_element_type=f32)
    feat = jnp.maximum(conv + shift_ref[...], 0.0)
    feat_bf = feat.astype(feat_ref.dtype)
    feat_ref[0] = feat_bf                                           # bf16 HBM stream

    vk = jnp.dot(wvko_ref[...], feat_bf, preferred_element_type=f32) + bvko_ref[...]
    if needs_mask:
        lane = n_idx * block_n + lax.broadcasted_iota(jnp.int32, (1, block_n), 1)
        vk = vk * (lane < n_pix).astype(f32)

    kq = vk[:ck + 1]
    v_aug = vk[voff:voff + c_out + 1]
    inv_k = lax.rsqrt(jnp.sum(kq[:ck] * kq[:ck], axis=0, keepdims=True))
    if needs_mask:
        inv_k = jnp.where(lane < n_pix, inv_k, 0.0)
    row_k = lax.broadcasted_iota(jnp.int32, kq.shape, 0)
    kn_aug = kq * jnp.where(row_k < ck, inv_k, 1.0)

    mat_ref[0] += lax.dot_general(kn_aug, v_aug, (((1,), (1,)), ((), ())),
                                  preferred_element_type=f32)


def _apply_kernel(gamma_ref, feat_ref, mat_ref, wq_ref, bq_ref, out_ref,
                  *, c_out, ck):
    f32 = jnp.float32
    feat_bf = feat_ref[0]                                           # (C, Tn) bf16

    q = jnp.dot(wq_ref[...], feat_bf, preferred_element_type=f32) + bq_ref[...]
    inv_q = lax.rsqrt(jnp.sum(q[:ck] * q[:ck], axis=0, keepdims=True))
    row_q = lax.broadcasted_iota(jnp.int32, q.shape, 0)
    qn_aug = q * jnp.where(row_q < ck, inv_q, 1.0)                  # (Ck+1, Tn)

    msum = lax.dot_general(mat_ref[0], qn_aug, (((0,), (0,)), ((), ())),
                           preferred_element_type=f32)              # (C+1, Tn)
    tail = gamma_ref[0, 0] * pl.reciprocal(msum[c_out:], approx=True)
    feat = feat_bf.astype(f32)                                      # f32 VPU math (v5e-safe)
    out_ref[0] = (feat * (msum[:c_out] * tail) + feat).astype(out_ref.dtype)


# ---------------------------------------------------------------------------
# Wrapper
# ---------------------------------------------------------------------------
def _pick_block_n(n_padded, per_lane_bytes, budget_bytes, cap=2048):
    best = 128
    t = 128
    while t <= min(cap, n_padded):
        if n_padded % t == 0 and t * per_lane_bytes <= budget_bytes:
            best = t
        t += 128
    return best


def _prep_params(params, bn_eps):
    (wc, bn_w, bn_b, bn_mean, bn_var, wq, bq, wk, bk, wv, bv, gamma) = params
    f32, bf16 = jnp.float32, jnp.bfloat16
    C = wc.shape[0]
    Ck = wq.shape[0]

    bn_scale = bn_w / jnp.sqrt(bn_var + bn_eps)
    bn_shift = bn_b - bn_mean * bn_scale
    wc_bn = (wc * bn_scale[:, None]).astype(f32)        # BN scale folded into conv weight
    shift = bn_shift.reshape(C, 1).astype(f32)

    # Stacked [Wk; 0(ones); pad-to-8; Wv; 0(ones)] so both slices are sublane aligned.
    voff = ((Ck + 1 + 7) // 8) * 8
    rows = voff + C + 1
    wvko = jnp.zeros((rows, C), f32)
    wvko = wvko.at[:Ck].set(wk).at[voff:voff + C].set(wv)
    bvko = jnp.zeros((rows, 1), f32)
    bvko = bvko.at[:Ck].set(bk).at[voff:voff + C].set(bv)
    bvko = bvko.at[Ck].set(1.0).at[voff + C].set(1.0)

    wq_aug = jnp.concatenate([wq, jnp.zeros((1, C), f32)], axis=0)
    bq_aug = jnp.concatenate([bq, jnp.ones((1, 1), f32)], axis=0)

    return (wc_bn, shift, wvko.astype(bf16), bvko, wq_aug.astype(bf16), bq_aug,
            gamma.astype(f32), voff, C, Ck)


def fam_forward(fsp, fcp, params, *, eps=1e-6, bn_eps=1e-5, block_n=None,
                force_two_pass=False):
    """Forward of FeatureAggregationModule. fsp/fcp: (B, C1/C2, H, W) float32."""
    f32, bf16 = jnp.float32, jnp.bfloat16
    B, C1, H, W = fsp.shape
    C2 = fcp.shape[1]
    N = H * W
    Np = -(-N // 128) * 128
    needs_mask = Np != N

    (wc_bn, shift, wvko, bvko, wq_aug, bq_aug, gamma,
     voff, C, Ck) = _prep_params(params, bn_eps)
    rows_vk = voff + C + 1

    fsp_f = fsp.reshape(B, C1, N).astype(f32)
    fcp_f = fcp.reshape(B, C2, N).astype(f32)
    if needs_mask:
        pad = Np - N
        fsp_f = jnp.pad(fsp_f, ((0, 0), (0, 0), (0, pad)))
        fcp_f = jnp.pad(fcp_f, ((0, 0), (0, 0), (0, pad)))

    # Rough per-lane VMEM working-set estimates (bytes) used for gating/tiling.
    per_lane_fused = (3 * (C1 + C2) * 4 + 7 * C * 4 + C * 2
                      + rows_vk * 4 + (C + 1) * 8 + (Ck + 1) * 20)
    per_lane_tiled = (3 * (C1 + C2) * 4 + 2 * C * 2 + 4 * C * 4
                      + rows_vk * 4 + (C + 1) * 8 + (Ck + 1) * 16)
    use_fused = (not force_two_pass) and (Np * per_lane_fused <= _FUSED_VMEM_BUDGET)

    if use_fused:
        kern = functools.partial(_fused_kernel, c_out=C, ck=Ck, voff=voff,
                                 n_pix=N, eps=eps, needs_mask=needs_mask)
        out_flat = pl.pallas_call(
            kern,
            out_shape=jax.ShapeDtypeStruct((B, C, Np), f32),
            grid_spec=pltpu.PrefetchScalarGridSpec(
                num_scalar_prefetch=0,
                grid=(B,),
                in_specs=[
                    pl.BlockSpec(memory_space=pltpu.MemorySpace.SMEM),      # gamma (1,1)
                    pl.BlockSpec((1, C1, Np), lambda b: (b, 0, 0)),         # fsp
                    pl.BlockSpec((1, C2, Np), lambda b: (b, 0, 0)),         # fcp
                    pl.BlockSpec((C, C1 + C2), lambda b: (0, 0)),           # conv weight (BN folded)
                    pl.BlockSpec((C, 1), lambda b: (0, 0)),                 # BN shift
                    pl.BlockSpec((rows_vk, C), lambda b: (0, 0)),           # [Wk;1;pad;Wv;1] bf16
                    pl.BlockSpec((rows_vk, 1), lambda b: (0, 0)),           # its bias
                    pl.BlockSpec((Ck + 1, C), lambda b: (0, 0)),            # [Wq;1] bf16
                    pl.BlockSpec((Ck + 1, 1), lambda b: (0, 0)),            # its bias
                ],
                out_specs=pl.BlockSpec((1, C, Np), lambda b: (b, 0, 0)),
                scratch_shapes=[pltpu.VMEM((C1 + C2, Np), f32)],            # fcat
            ),
            compiler_params=pltpu.CompilerParams(
                dimension_semantics=("parallel",),
                vmem_limit_bytes=_VMEM_LIMIT),
        )(gamma, fsp_f, fcp_f, wc_bn, shift, wvko, bvko, wq_aug, bq_aug)
    else:
        # TODO(synk): add an inner-pipelined fused variant (emit_pipeline over N
        # tiles with feat resident in VMEM) to extend the fused path to larger N.
        if block_n is None or Np % block_n != 0 or block_n % 128 != 0:
            block_n = _pick_block_n(Np, per_lane_tiled, _TILE_VMEM_BUDGET)
        n_tiles = Np // block_n

        stats = functools.partial(_stats_kernel, c_out=C, ck=Ck, voff=voff,
                                  n_pix=N, block_n=block_n, needs_mask=needs_mask)
        feat, mat = pl.pallas_call(
            stats,
            out_shape=(jax.ShapeDtypeStruct((B, C, Np), bf16),
                       jax.ShapeDtypeStruct((B, Ck + 1, C + 1), f32)),
            grid_spec=pltpu.PrefetchScalarGridSpec(
                num_scalar_prefetch=0,
                grid=(B, n_tiles),
                in_specs=[
                    pl.BlockSpec((1, C1, block_n), lambda b, n: (b, 0, n)),
                    pl.BlockSpec((1, C2, block_n), lambda b, n: (b, 0, n)),
                    pl.BlockSpec((C, C1 + C2), lambda b, n: (0, 0)),
                    pl.BlockSpec((C, 1), lambda b, n: (0, 0)),
                    pl.BlockSpec((rows_vk, C), lambda b, n: (0, 0)),
                    pl.BlockSpec((rows_vk, 1), lambda b, n: (0, 0)),
                ],
                out_specs=[
                    pl.BlockSpec((1, C, block_n), lambda b, n: (b, 0, n)),   # feat bf16
                    pl.BlockSpec((1, Ck + 1, C + 1), lambda b, n: (b, 0, 0)),  # stats (resident)
                ],
                scratch_shapes=[pltpu.VMEM((C1 + C2, block_n), f32)],
            ),
            compiler_params=pltpu.CompilerParams(
                dimension_semantics=("parallel", "arbitrary"),
                vmem_limit_bytes=_VMEM_LIMIT),
        )(fsp_f, fcp_f, wc_bn, shift, wvko, bvko)
        # TODO(synk): v7x with B==1 — split pass 1's N axis across the two
        # TensorCores with per-core partial `mat` accumulators combined here.

        # Fold eps into the k_sum column so the apply matmul yields the exact denominator.
        mat = mat.at[:, :Ck, C].add(eps)

        apply = functools.partial(_apply_kernel, c_out=C, ck=Ck)
        out_flat = pl.pallas_call(
            apply,
            out_shape=jax.ShapeDtypeStruct((B, C, Np), f32),
            grid_spec=pltpu.PrefetchScalarGridSpec(
                num_scalar_prefetch=0,
                grid=(B, n_tiles),
                in_specs=[
                    pl.BlockSpec(memory_space=pltpu.MemorySpace.SMEM),         # gamma
                    pl.BlockSpec((1, C, block_n), lambda b, n: (b, 0, n)),     # feat bf16
                    pl.BlockSpec((1, Ck + 1, C + 1), lambda b, n: (b, 0, 0)),  # stats
                    pl.BlockSpec((Ck + 1, C), lambda b, n: (0, 0)),            # [Wq;1] bf16
                    pl.BlockSpec((Ck + 1, 1), lambda b, n: (0, 0)),            # its bias
                ],
                out_specs=pl.BlockSpec((1, C, block_n), lambda b, n: (b, 0, n)),
            ),
            compiler_params=pltpu.CompilerParams(
                dimension_semantics=("parallel", "parallel"),
                vmem_limit_bytes=_VMEM_LIMIT),
        )(gamma, feat, mat, wq_aug, bq_aug)

    if needs_mask:
        out_flat = out_flat[:, :, :N]
    return out_flat.reshape(B, C, H, W)


# ---------------------------------------------------------------------------
# Pure-JAX reference and deterministic parameter init
# ---------------------------------------------------------------------------
def fam_reference(fsp, fcp, params, *, eps=1e-6, bn_eps=1e-5):
    """Pure-JAX mirror of the PyTorch FeatureAggregationModule forward
    (BatchNorm in inference mode)."""
    (wc, bn_w, bn_b, bn_mean, bn_var, wq, bq, wk, bk, wv, bv, gamma) = params
    B, C1, H, W = fsp.shape
    N = H * W
    C = wc.shape[0]

    fcat = jnp.concatenate([fsp, fcp], axis=1).reshape(B, -1, N)
    conv = jnp.einsum('oc,bcn->bon', wc, fcat)
    scale = bn_w / jnp.sqrt(bn_var + bn_eps)
    shift = bn_b - bn_mean * scale
    feat = jnp.maximum(conv * scale[None, :, None] + shift[None, :, None], 0.0)

    def conv1x1(w, b):
        return jnp.einsum('oc,bcn->bon', w, feat) + b.reshape(1, -1, 1)

    def l2n(t):
        return t / jnp.linalg.norm(t, axis=-2, keepdims=True)

    Q = conv1x1(wq, bq)
    K = conv1x1(wk, bk)
    V = conv1x1(wv, bv)
    Qn = jnp.transpose(l2n(Q), (0, 2, 1))             # (B, N, Ck)
    Kn = l2n(K)                                       # (B, Ck, N)
    tailor = 1.0 / (N + jnp.einsum('bnc,bc->bn', Qn, jnp.sum(Kn, axis=-1) + eps))
    value_sum = jnp.sum(V, axis=-1)[:, :, None]       # (B, C, 1)
    matrix = jnp.einsum('bmn,bcn->bmc', Kn, V)        # (B, Ck, C)
    matrix_sum = value_sum + jnp.einsum('bnm,bmc->bcn', Qn, matrix)
    weight_value = matrix_sum * tailor[:, None, :]
    atten = gamma[0, 0] * weight_value
    feat_out = feat * atten + feat
    return feat_out.reshape(B, C, H, W)


def make_params(key, in_chan, out_chan, scale=8):
    """Deterministic init mirroring the module parameters (1x1 conv weights as
    (Cout, Cin)); BatchNorm uses inference-mode running stats."""
    ck = out_chan // scale
    k = jax.random.split(key, 11)
    f32 = jnp.float32

    s_c = 1.0 / jnp.sqrt(jnp.float32(in_chan))
    wc = jax.random.normal(k[0], (out_chan, in_chan), f32) * s_c

    bn_w = jax.random.uniform(k[1], (out_chan,), f32, 0.5, 1.5)
    bn_b = 0.1 * jax.random.normal(k[2], (out_chan,), f32)
    bn_mean = 0.1 * jax.random.normal(k[3], (out_chan,), f32)
    bn_var = jax.random.uniform(k[4], (out_chan,), f32, 0.5, 1.5)

    s_q = 1.0 / jnp.sqrt(jnp.float32(out_chan))
    wq = jax.random.uniform(k[5], (ck, out_chan), f32, -s_q, s_q)
    bq = jax.random.uniform(k[6], (ck, 1), f32, -s_q, s_q)
    wk = jax.random.uniform(k[7], (ck, out_chan), f32, -s_q, s_q)
    bk = jax.random.uniform(k[8], (ck, 1), f32, -s_q, s_q)
    wv = jax.random.uniform(k[9], (out_chan, out_chan), f32, -s_q, s_q)
    bv = jax.random.uniform(k[10], (out_chan, 1), f32, -s_q, s_q)

    # The module initializes Attention.gamma = 0 (=> out == feat); use a nonzero
    # value so the attention path is actually exercised.
    gamma = jnp.full((1, 1), 0.5, f32)
    return (wc, bn_w, bn_b, bn_mean, bn_var, wq, bq, wk, bk, wv, bv, gamma)


if __name__ == "__main__":
    B, C1, C2, H, W = 2, 16, 16, 16, 16      # in_chan=32, out_chan=32 -> Ck=4, N=256
    C = 32
    key = jax.random.PRNGKey(0)
    k1, k2, kp = jax.random.split(key, 3)
    fsp = jax.random.normal(k1, (B, C1, H, W), jnp.float32)
    fcp = jax.random.normal(k2, (B, C2, H, W), jnp.float32)
    params = make_params(kp, in_chan=C1 + C2, out_chan=C, scale=8)

    ref = fam_reference(fsp, fcp, params)
    tol = 1e-2 * (float(jnp.max(jnp.abs(ref))) + 1.0)

    # Fused single-kernel path (feat resident in VMEM).
    out_fused = jax.block_until_ready(fam_forward(fsp, fcp, params))
    err_fused = float(jnp.max(jnp.abs(out_fused - ref)))
    assert err_fused < tol, f"fused mismatch: max abs err {err_fused} (tol {tol})"

    # Two-pass fallback path (bf16 feat HBM round trip).
    out_2p = jax.block_until_ready(
        fam_forward(fsp, fcp, params, force_two_pass=True))
    err_2p = float(jnp.max(jnp.abs(out_2p - ref)))
    assert err_2p < tol, f"two-pass mismatch: max abs err {err_2p} (tol {tol})"

    print("KERNEL_OK")
</pallas_src>

<mosaic_0001>
module attributes {stable_mosaic.version = 11 : i64} {
  func.func @_fused_kernel(%arg0: i32, %arg1: memref<1x1xf32, #tpu.memory_space<smem>>, %arg2: memref<1x16x256xf32, #tpu.memory_space<vmem>>, %arg3: memref<1x16x256xf32, #tpu.memory_space<vmem>>, %arg4: memref<32x32xf32, #tpu.memory_space<vmem>>, %arg5: memref<32x1xf32, #tpu.memory_space<vmem>>, %arg6: memref<41x32xbf16, #tpu.memory_space<vmem>>, %arg7: memref<41x1xf32, #tpu.memory_space<vmem>>, %arg8: memref<5x32xbf16, #tpu.memory_space<vmem>>, %arg9: memref<5x1xf32, #tpu.memory_space<vmem>>, %arg10: memref<1x32x256xf32, #tpu.memory_space<vmem>>, %arg11: memref<32x256xf32, #tpu.memory_space<vmem>>) attributes {dimension_semantics = [#tpu.dimension_semantics<parallel>], iteration_bounds = array<i64: 2>, scalar_prefetch = 0 : i64, scratch_operands = 1 : i64, tpu.core_type = #tpu.core_type<tc>, window_params = [{transform_indices = @transform_0, window_bounds = array<i64: 1, 1>}, {transform_indices = @transform_1, window_bounds = array<i64: 1, 16, 256>}, {transform_indices = @transform_2, window_bounds = array<i64: 1, 16, 256>}, {pipeline_mode = #tpu.pipeline_mode<synchronous>, transform_indices = @transform_3, window_bounds = array<i64: 32, 32>}, {pipeline_mode = #tpu.pipeline_mode<synchronous>, transform_indices = @transform_4, window_bounds = array<i64: 32, 1>}, {pipeline_mode = #tpu.pipeline_mode<synchronous>, transform_indices = @transform_5, window_bounds = array<i64: 41, 32>}, {pipeline_mode = #tpu.pipeline_mode<synchronous>, transform_indices = @transform_6, window_bounds = array<i64: 41, 1>}, {pipeline_mode = #tpu.pipeline_mode<synchronous>, transform_indices = @transform_7, window_bounds = array<i64: 5, 32>}, {pipeline_mode = #tpu.pipeline_mode<synchronous>, transform_indices = @transform_8, window_bounds = array<i64: 5, 1>}, {transform_indices = @transform_9, window_bounds = array<i64: 1, 32, 256>}]} {
    %c0 = arith.constant 0 : index
    %c0_0 = arith.constant 0 : index
    %c0_1 = arith.constant 0 : index
    %0 = vector.load %arg2[%c0, %c0_0, %c0_1] : memref<1x16x256xf32, #tpu.memory_space<vmem>>, vector<1x16x256xf32>
    %1 = vector.shape_cast %0 : vector<1x16x256xf32> to vector<16x256xf32>
    %c0_2 = arith.constant 0 : index
    %c0_3 = arith.constant 0 : index
    %2 = vector.load %arg11[%c0_2, %c0_3] : memref<32x256xf32, #tpu.memory_space<vmem>>, vector<16x256xf32>
    tpu.vector_store %arg11[%c0_2, %c0_3], %1 {strides = array<i32>} : memref<32x256xf32, #tpu.memory_space<vmem>>, vector<16x256xf32>,
    %c0_4 = arith.constant 0 : index
    %c0_5 = arith.constant 0 : index
    %c0_6 = arith.constant 0 : index
    %3 = vector.load %arg3[%c0_4, %c0_5, %c0_6] : memref<1x16x256xf32, #tpu.memory_space<vmem>>, vector<1x16x256xf32>
    %4 = vector.shape_cast %3 : vector<1x16x256xf32> to vector<16x256xf32>
    %c16 = arith.constant 16 : index
    %c0_7 = arith.constant 0 : index
    %5 = vector.load %arg11[%c16, %c0_7] : memref<32x256xf32, #tpu.memory_space<vmem>>, vector<16x256xf32>
    tpu.vector_store %arg11[%c16, %c0_7], %4 {strides = array<i32>} : memref<32x256xf32, #tpu.memory_space<vmem>>, vector<16x256xf32>,
    %c0_8 = arith.constant 0 : index
    %c0_9 = arith.constant 0 : index
    %6 = vector.load %arg4[%c0_8, %c0_9] : memref<32x32xf32, #tpu.memory_space<vmem>>, vector<32x32xf32>
    %c0_10 = arith.constant 0 : index
    %c0_11 = arith.constant 0 : index
    %7 = vector.load %arg11[%c0_10, %c0_11] : memref<32x256xf32, #tpu.memory_space<vmem>>, vector<32x256xf32>
    %cst = arith.constant dense<0.000000e+00> : vector<32x256xf32>
    %8 = tpu.matmul %6, %7, %cst {dimension_numbers = #tpu.dot_dimension_numbers<[1], [0], [0], [1], [0, 0, 1, 1], [], []>} : vector<32x32xf32>, vector<32x256xf32>, vector<32x256xf32> -> vector<32x256xf32>
    %c0_12 = arith.constant 0 : index
    %c0_13 = arith.constant 0 : index
    %9 = vector.load %arg5[%c0_12, %c0_13] : memref<32x1xf32, #tpu.memory_space<vmem>>, vector<32x1xf32>
    %10 = vector.broadcast %9 : vector<32x1xf32> to vector<32x256xf32>
    %11 = arith.addf %8, %10 : vector<32x256xf32>
    %cst_14 = arith.constant 0.000000e+00 : f32
    %12 = vector.broadcast %cst_14 : f32 to vector<32x256xf32>
    %13 = arith.maximumf %11, %12 : vector<32x256xf32>
    %14 = arith.truncf %13 : vector<32x256xf32> to vector<32x256xbf16>
    %c0_15 = arith.constant 0 : index
    %c0_16 = arith.constant 0 : index
    %15 = vector.load %arg6[%c0_15, %c0_16] : memref<41x32xbf16, #tpu.memory_space<vmem>>, vector<41x32xbf16>
    %cst_17 = arith.constant dense<0.000000e+00> : vector<41x256xf32>
    %16 = tpu.matmul %15, %14, %cst_17 {dimension_numbers = #tpu.dot_dimension_numbers<[1], [0], [0], [1], [0, 0, 1, 1], [], []>} : vector<41x32xbf16>, vector<32x256xbf16>, vector<41x256xf32> -> vector<41x256xf32>
    %c0_18 = arith.constant 0 : index
    %c0_19 = arith.constant 0 : index
    %17 = vector.load %arg7[%c0_18, %c0_19] : memref<41x1xf32, #tpu.memory_space<vmem>>, vector<41x1xf32>
    %18 = vector.broadcast %17 : vector<41x1xf32> to vector<41x256xf32>
    %19 = arith.addf %16, %18 : vector<41x256xf32>
    %20 = vector.extract_strided_slice %19 {offsets = [0, 0], sizes = [5, 256], strides = [1, 1]} : vector<41x256xf32> to vector<5x256xf32>
    %21 = vector.extract_strided_slice %19 {offsets = [8, 0], sizes = [33, 256], strides = [1, 1]} : vector<41x256xf32> to vector<33x256xf32>
    %22 = vector.extract_strided_slice %20 {offsets = [0, 0], sizes = [4, 256], strides = [1, 1]} : vector<5x256xf32> to vector<4x256xf32>
    %23 = vector.extract_strided_slice %20 {offsets = [0, 0], sizes = [4, 256], strides = [1, 1]} : vector<5x256xf32> to vector<4x256xf32>
    %24 = arith.mulf %22, %23 : vector<4x256xf32>
    %cst_20 = arith.constant dense<0.000000e+00> : vector<256xf32>
    %25 = vector.multi_reduction <add>, %24, %cst_20 [0] : vector<4x256xf32> to vector<256xf32>
    %26 = vector.shape_cast %25 : vector<256xf32> to vector<1x256xf32>
    %27 = math.rsqrt %26 : vector<1x256xf32>
    %28 = tpu.iota {dimensions = array<i32: 0>} : vector<5x256xi32>
    %c4_i32 = arith.constant 4 : i32
    %29 = vector.broadcast %c4_i32 : i32 to vector<5x256xi32>
    %30 = arith.cmpi slt, %28, %29 : vector<5x256xi32>
    %cst_21 = arith.constant 1.000000e+00 : f32
    %31 = vector.shape_cast %27 : vector<1x256xf32> to vector<1x256xf32>
    %32 = vector.broadcast %31 : vector<1x256xf32> to vector<5x256xf32>
    %33 = vector.broadcast %cst_21 : f32 to vector<5x256xf32>
    %34 = arith.select %30, %32, %33 : vector<5x256xi1>, vector<5x256xf32>
    %35 = arith.mulf %20, %34 : vector<5x256xf32>
    %cst_22 = arith.constant dense<0.000000e+00> : vector<5x33xf32>
    %36 = tpu.matmul %35, %21, %cst_22 {dimension_numbers = #tpu.dot_dimension_numbers<[1], [1], [0], [0], [0, 0, 1, 0], [], []>} : vector<5x256xf32>, vector<33x256xf32>, vector<5x33xf32> -> vector<5x33xf32>
    %37 = tpu.iota {dimensions = array<i32: 0>} : vector<5x33xi32>
    %38 = tpu.iota {dimensions = array<i32: 1>} : vector<5x33xi32>
    %c4_i32_23 = arith.constant 4 : i32
    %39 = vector.broadcast %c4_i32_23 : i32 to vector<5x33xi32>
    %40 = arith.cmpi slt, %37, %39 : vector<5x33xi32>
    %c32_i32 = arith.constant 32 : i32
    %41 = vector.broadcast %c32_i32 : i32 to vector<5x33xi32>
    %42 = arith.cmpi eq, %38, %41 : vector<5x33xi32>
    %43 = arith.andi %40, %42 : vector<5x33xi1>
    %cst_24 = arith.constant 9.99999997E-7 : f32
    %cst_25 = arith.constant 0.000000e+00 : f32
    %44 = vector.broadcast %cst_24 : f32 to vector<5x33xf32>
    %45 = vector.broadcast %cst_25 : f32 to vector<5x33xf32>
    %46 = arith.select %43, %44, %45 : vector<5x33xi1>, vector<5x33xf32>
    %47 = arith.addf %36, %46 : vector<5x33xf32>
    %c0_26 = arith.constant 0 : index
    %c0_27 = arith.constant 0 : index
    %48 = vector.load %arg8[%c0_26, %c0_27] : memref<5x32xbf16, #tpu.memory_space<vmem>>, vector<5x32xbf16>
    %cst_28 = arith.constant dense<0.000000e+00> : vector<5x256xf32>
    %49 = tpu.matmul %48, %14, %cst_28 {dimension_numbers = #tpu.dot_dimension_numbers<[1], [0], [0], [1], [0, 0, 1, 1], [], []>} : vector<5x32xbf16>, vector<32x256xbf16>, vector<5x256xf32> -> vector<5x256xf32>
    %c0_29 = arith.constant 0 : index
    %c0_30 = arith.constant 0 : index
    %50 = vector.load %arg9[%c0_29, %c0_30] : memref<5x1xf32, #tpu.memory_space<vmem>>, vector<5x1xf32>
    %51 = vector.broadcast %50 : vector<5x1xf32> to vector<5x256xf32>
    %52 = arith.addf %49, %51 : vector<5x256xf32>
    %53 = vector.extract_strided_slice %52 {offsets = [0, 0], sizes = [4, 256], strides = [1, 1]} : vector<5x256xf32> to vector<4x256xf32>
    %54 = vector.extract_strided_slice %52 {offsets = [0, 0], sizes = [4, 256], strides = [1, 1]} : vector<5x256xf32> to vector<4x256xf32>
    %55 = arith.mulf %53, %54 : vector<4x256xf32>
    %cst_31 = arith.constant dense<0.000000e+00> : vector<256xf32>
    %56 = vector.multi_reduction <add>, %55, %cst_31 [0] : vector<4x256xf32> to vector<256xf32>
    %57 = vector.shape_cast %56 : vector<256xf32> to vector<1x256xf32>
    %58 = math.rsqrt %57 : vector<1x256xf32>
    %59 = tpu.iota {dimensions = array<i32: 0>} : vector<5x256xi32>
    %c4_i32_32 = arith.constant 4 : i32
    %60 = vector.broadcast %c4_i32_32 : i32 to vector<5x256xi32>
    %61 = arith.cmpi slt, %59, %60 : vector<5x256xi32>
    %cst_33 = arith.constant 1.000000e+00 : f32
    %62 = vector.shape_cast %58 : vector<1x256xf32> to vector<1x256xf32>
    %63 = vector.broadcast %62 : vector<1x256xf32> to vector<5x256xf32>
    %64 = vector.broadcast %cst_33 : f32 to vector<5x256xf32>
    %65 = arith.select %61, %63, %64 : vector<5x256xi1>, vector<5x256xf32>
    %66 = arith.mulf %52, %65 : vector<5x256xf32>
    %cst_34 = arith.constant dense<0.000000e+00> : vector<33x256xf32>
    %67 = tpu.matmul %47, %66, %cst_34 {dimension_numbers = #tpu.dot_dimension_numbers<[0], [0], [1], [1], [0, 1, 1, 1], [], []>} : vector<5x33xf32>, vector<5x256xf32>, vector<33x256xf32> -> vector<33x256xf32>
    %c0_35 = arith.constant 0 : index
    %c0_36 = arith.constant 0 : index
    %68 = memref.load %arg1[%c0_35, %c0_36] : memref<1x1xf32, #tpu.memory_space<smem>>
    %69 = vector.extract_strided_slice %67 {offsets = [32, 0], sizes = [1, 256], strides = [1, 1]} : vector<33x256xf32> to vector<1x256xf32>
    %70 = tpu.reciprocal %69 {approx = true} : vector<1x256xf32> -> vector<1x256xf32>
    %71 = vector.broadcast %68 : f32 to vector<1x256xf32>
    %72 = arith.mulf %71, %70 : vector<1x256xf32>
    %73 = vector.extract_strided_slice %67 {offsets = [0, 0], sizes = [32, 256], strides = [1, 1]} : vector<33x256xf32> to vector<32x256xf32>
    %74 = vector.broadcast %72 : vector<1x256xf32> to vector<32x256xf32>
    %75 = arith.mulf %73, %74 : vector<32x256xf32>
    %76 = arith.mulf %13, %75 : vector<32x256xf32>
    %77 = arith.addf %76, %13 : vector<32x256xf32>
    %c0_37 = arith.constant 0 : index
    %c0_38 = arith.constant 0 : index
    %c0_39 = arith.constant 0 : index
    %78 = vector.load %arg10[%c0_37, %c0_38, %c0_39] : memref<1x32x256xf32, #tpu.memory_space<vmem>>, vector<1x32x256xf32>
    %79 = vector.shape_cast %78 : vector<1x32x256xf32> to vector<32x256xf32>
    %80 = vector.shape_cast %77 : vector<32x256xf32> to vector<1x32x256xf32>
    tpu.vector_store %arg10[%c0_37, %c0_38, %c0_39], %80 {strides = array<i32>} : memref<1x32x256xf32, #tpu.memory_space<vmem>>, vector<1x32x256xf32>,
    return
  }
  func.func @transform_0(%arg0: i32) -> (i32, i32) {
    %c0_i32 = arith.constant 0 : i32
    %c0_i32_0 = arith.constant 0 : i32
    %c0_i32_1 = arith.constant 0 : i32
    return %c0_i32, %c0_i32_0 : i32, i32
  }
  func.func @transform_1(%arg0: i32) -> (i32, i32, i32) {
    %c0_i32 = arith.constant 0 : i32
    %c0_i32_0 = arith.constant 0 : i32
    %c0_i32_1 = arith.constant 0 : i32
    return %arg0, %c0_i32, %c0_i32_0 : i32, i32, i32
  }
  func.func @transform_2(%arg0: i32) -> (i32, i32, i32) {
    %c0_i32 = arith.constant 0 : i32
    %c0_i32_0 = arith.constant 0 : i32
    %c0_i32_1 = arith.constant 0 : i32
    return %arg0, %c0_i32, %c0_i32_0 : i32, i32, i32
  }
  func.func @transform_3(%arg0: i32) -> (i32, i32) {
    %c0_i32 = arith.constant 0 : i32
    %c0_i32_0 = arith.constant 0 : i32
    %c0_i32_1 = arith.constant 0 : i32
    return %c0_i32, %c0_i32_0 : i32, i32
  }
  func.func @transform_4(%arg0: i32) -> (i32, i32) {
    %c0_i32 = arith.constant 0 : i32
    %c0_i32_0 = arith.constant 0 : i32
    %c0_i32_1 = arith.constant 0 : i32
    return %c0_i32, %c0_i32_0 : i32, i32
  }
  func.func @transform_5(%arg0: i32) -> (i32, i32) {
    %c0_i32 = arith.constant 0 : i32
    %c0_i32_0 = arith.constant 0 : i32
    %c0_i32_1 = arith.constant 0 : i32
    return %c0_i32, %c0_i32_0 : i32, i32
  }
  func.func @transform_6(%arg0: i32) -> (i32, i32) {
    %c0_i32 = arith.constant 0 : i32
    %c0_i32_0 = arith.constant 0 : i32
    %c0_i32_1 = arith.constant 0 : i32
    return %c0_i32, %c0_i32_0 : i32, i32
  }
  func.func @transform_7(%arg0: i32) -> (i32, i32) {
    %c0_i32 = arith.constant 0 : i32
    %c0_i32_0 = arith.constant 0 : i32
    %c0_i32_1 = arith.constant 0 : i32
    return %c0_i32, %c0_i32_0 : i32, i32
  }
  func.func @transform_8(%arg0: i32) -> (i32, i32) {
    %c0_i32 = arith.constant 0 : i32
    %c0_i32_0 = arith.constant 0 : i32
    %c0_i32_1 = arith.constant 0 : i32
    return %c0_i32, %c0_i32_0 : i32, i32
  }
  func.func @transform_9(%arg0: i32) -> (i32, i32, i32) {
    %c0_i32 = arith.constant 0 : i32
    %c0_i32_0 = arith.constant 0 : i32
    %c0_i32_1 = arith.constant 0 : i32
    return %arg0, %c0_i32, %c0_i32_0 : i32, i32, i32
  }
}

</mosaic_0001>

<bundles_post_ra>
// kernel: tpu_custom_call.1
= control target key start
LH: loop header
LB: loop body
LE: loop exit
PB: predicated region body
PF: predicated region fallthrough
CT: control target
= control target key end

     0   :  { %s1709_s0 = inlined_call_operand.<no memory space> [shape: f32[1,1], index: 0, kind: input, shape index: {}]   ;;  %s1710_s1 = inlined_call_operand.vmem [shape: f32[2,16,256], index: 1, kind: input, shape index: {}]   ;;  %s1711_s2 = inlined_call_operand.vmem [shape: f32[2,16,256], index: 2, kind: input, shape index: {}]   ;;  %s1712_s3 = inlined_call_operand.hbm [shape: f32[32,32], index: 3, kind: input, shape index: {}]   ;;  %s1713_s4 = inlined_call_operand.vmem [shape: f32[32,1], index: 4, kind: input, shape index: {}]   ;;  %s1714_s5 = inlined_call_operand.vmem [shape: bf16[41,32], index: 5, kind: input, shape index: {}]   ;;  %s1715_s6 = inlined_call_operand.vmem [shape: f32[41,1], index: 6, kind: input, shape index: {}]   ;;  %s1716_s7 = inlined_call_operand.vmem [shape: bf16[5,32], index: 7, kind: input, shape index: {}]   ;;  %s1717_s8 = inlined_call_operand.vmem [shape: f32[5,1], index: 8, kind: input, shape index: {}]   ;;  %s1718_s9 = inlined_call_operand.hbm [shape: f32[2,32,256], index: 9, kind: output, shape index: {}]  }
   0x1   :  { %14 = sst [smem:[#allocation3]] %s1709_s0 }
   0x2   :  { %15 = vsyncpa [#allocation5], 0 }
   0x3   :  { %16 = vsyncpa [#allocation6], 0 }
   0x4   :  { %18 = vsyncpa [#allocation6 + $0x1], 0  ;;  %s1416_s11 = smov 0   ;;  %s1418_s12 = smov 0  }
   0x5   :  { %s1420_s13 = smov 0   ;;  %s1422_s14 = smov 0  }
   0x6 LB: > { %s1437_s0 = sadd.s32 4294967295, %s1353_s14   ;;  %s1133_s15 = sadd.s32 4294967294, %s1353_s14   ;;  %s1353_s14 = sphi %s1422_s14, %s1734_s14   ;;  %s1349_s13 = sphi %s1420_s13, %s1733_s13   ;;  %s1345_s12 = sphi %s1418_s12, %s1732_s12   ;;  %s1341_s11 = sphi %s1416_s11, %s1731_s11  }
   0x7   : > { %s1441_s16 = sadd.s32 1, %s1353_s14   ;;  %s230_s17 = sadd.s32 1, %s1349_s13 }
   0x8   : > { %s227_s18 = ssub.s32 %s1353_s14, %s1441_s16  ;;  %p240_p0 = scmp.ne.s32.totalorder %s1349_s13, %s1345_s12 }
   0x9   : > { %p228_p1 = scmp.eq.s32.totalorder %s227_s18, 0  ;;  %p241_p2 = scmp.eq.s32.totalorder %s1437_s0, 1 }
   0xa   : > { %p246_p3 = scmp.ne.s32.totalorder %s1345_s12, %s1341_s11  ;;  %p247_p4 = scmp.eq.s32.totalorder %s1133_s15, 1 }
   0xb   : > { %s1452_s19 = scalar_select %p228_p1, %s1349_s13, %s230_s17  }
   0xc   : > { %p1454_p5 = por %p241_p2, %p240_p0  ;;  %p1458_p6 = por %p247_p4, %p246_p3 }
   0xd   : > { %p1134_p7 = scmp.ge.s32.totalorder %s1353_s14, 1  ;;  %p254_p8 = scmp.lt.s32.totalorder %s1353_s14, 3 }
   0xe   : > { %s1722_s20 = scalar_select %p1454_p5, 1, 0 }
   0xf   : > { %s1723_s21 = scalar_select %p1458_p6, 1, 0 }
  0x10   : > { %p1719_p9 = scmp.eq.s32.totalorder %s1437_s0, 0  ;;  %p1465_p10 = pnand %p1134_p7, %p254_p8 }
  0x11   : > { %s1355_s23 = smov [#allocation4]   ;;  %s1259_s28 = scalar_lea.hbm %s1712_s3, 512 }
  0x12   : > { %s1724_s22 = scalar_select %p1465_p10, 1, 0 }
  0x13   : > { %s269_s24 = sshll.u32 %s1355_s23, 4  ;;  %p1192_p11 = pneg %p1465_p10  ;;  %s270_s24 = int_to_ptr.vmem [resolvable:$true] %s269_s24 }
  0x14   : > { %p1260_p13 = scmp.ne.s32.totalorder %s1712_s3, %s1259_s28  ;;  %p1266_p3 = scmp.lt.u32.totalorder %s1259_s28, %s1712_s3 }
  0x15   : > { %p1473_p12 = pnand %p1719_p9, %p1192_p11 }
  0x17   : > { %p1261_p0 = pneg %p1473_p12 }
  0x19   : > { %p1262_p1 = pnand %p1261_p0, %p1260_p13 }
  0x1b   : > { %p1263_p2 = pneg %p1262_p1 }
  0x1d   : > { %p1268_p4 = pnand %p1266_p3, %p1263_p2 }
  0x1f   : > { %1271 = shalt.err (!%p1268_p4)
}
  0x20   : > { %s1272_s17 = scalar_lea.vmem %s270_s24, 512  ;;  %p1280_p9 = scmp.lt.s32.totalorder %s270_s24, %s270_s24 }
  0x21   : > { %p1273_p7 = scmp.ne.s32.totalorder %s270_s24, %s1272_s17  ;;  %p1281_p6 = scmp.lt.s32.totalorder %s1272_s17, %s1272_s17 }
  0x23   : > { %p1275_p8 = pnand %p1273_p7, %p1261_p0  ;;  %p1282_p5 = por %p1281_p6, %p1280_p9 }
  0x25   : > { %p1276_p11 = pneg %p1275_p8 }
  0x27   : > { %p1283_p10 = pnand %p1282_p5, %p1276_p11 }
  0x29   : > { %1286 = shalt.err (!%p1283_p10)
}
  0x2a   : > { %s1356_s18 = smov 128   ;;  %s1357_s23 = smov 8  }
  0x2b   : > { %1195 = dma.hbm_to_vmem [thread:$0]  (!%p1473_p12), %s1712_s3, 512, %s270_s24, [#allocation5], %s1356_s18, %s1356_s18, %s1357_s23  }
  0x2c   : > { %p1726_p13 = scmp.ne.s32.totalorder %s1724_s22, 0 }
  0x2d   : > { %p1727_p1 = scmp.eq.s32.totalorder (!%p1726_p13), %s1437_s0, 0 }
  0x2e   : > { %316 = sbr.rel (%p1726_p13) target bundleno = 1161 (0x489), region = 56 }
  0x35   : > { %1332 = dma.done.wait (%p1727_p1), [#allocation5], 512   ;;  %p1728_p0 = pmov %p1727_p1 }
  0x36   : > { %p357_p5 = scmp.lt.s32.totalorder %s1437_s0, 1  ;;  %v1358_v0 = vmov 0.0   ;;  %v1359_v1 = vmov 0   ;;  %v396_v14 = vld [vmem:[%s1713_s4] sm:$0xff]  ;;  %v398_v15 = vld [vmem:[%s1713_s4 + $0x10] sm:$0xff]  ;;  %v397_v16 = vld [vmem:[%s1713_s4 + $0x8] sm:$0xff] }
  0x37   : > { %1334 = vsyncadd (%p1728_p0), [#allocation5], 4294966784  ;;  %497 = vmatprep.mubr.f32.mxu0 %v1358_v0  ;;  %1242 = vset.pattern.permute.xlu0 %v1359_v1  ;;  %v384_v17 = vld [vmem:[#allocation4] sm:$0xff]  ;;  %vm420_vm0 = vcmask 261120   ;;  %v399_v18 = vld [vmem:[%s1713_s4 + $0x18] sm:$0xff]  ;;  %vm665_vm1 = vcmask 1043456  }
  0x38   : > { %s358_s25 = scalar_select %p357_p5, %s1437_s0, 1  ;;  %1243 = vset.pattern.permute.xlu1 %v1359_v1  ;;  %632 = vmatprep.mubr.bf16.mxu1 %v1359_v1  ;;  %v540_v19 = vld [vmem:[%s1715_s6] sm:$0xff]  ;;  %v541_v20 = vld [vmem:[%s1715_s6 + $0x8] sm:$0xff]  ;;  %v542_v22 = vld [vmem:[%s1715_s6 + $0x10] sm:$0xff]  ;;  %vm885_vm5 = vcmask 1044480   ;;  %vm869_vm6 = vcmask 39936  }
  0x39   : > { %402 = vperm.xlu0 %1242, %v396_v14   ;;  %412 = vperm.xlu1 %1243, %v398_v15   ;;  %v385_v21 = vld [vmem:[#allocation4 + $0x8] sm:$0xff]  ;;  %v543_v23 = vld [vmem:[%s1715_s6 + $0x18] sm:$0xff]  ;;  %v386_v24 = vld [vmem:[#allocation4 + $0x10] sm:$0xff]  ;;  %s987_s27 = sld [smem:[#allocation3]]  ;;  %s1169_s24 = sshll.u32 %s1437_s0, 10 }
  0x3a   : > { %s1167_s22 = sshll.u32 %s358_s25, 5  ;;  %v544_v25 = vld [vmem:[%s1715_s6 + $0x20] sm:$0xff]  ;;  %v545_v26 = vld [vmem:[%s1715_s6 + $0x28] sm:$0x1]  ;;  %v387_v27 = vld [vmem:[#allocation4 + $0x18] sm:$0xff]  ;;  %s354_s25 = sand.u32 1, %s1345_s12  }
  0x3b   : > { %s361_s29 = scalar_lea.vmem %s1710_s1, %s1167_s22  ;;  %s366_s15 = scalar_lea.vmem %s1711_s2, %s1167_s22  ;;  %v765_v28 = vld [vmem:[%s1717_s8] sm:$0x1f]  ;;  %v1245_v62 = vld [vmem:[%s1714_s5 + $0x8] sm:$0xff]   ;;  %v1246_v63 = vld [vmem:[%s1714_s5 + $0x10] sm:$0x1f]  }
  0x3c   : > { %v369_v2 = vld [vmem:[%s361_s29 + $0x8] sm:$0xff]  ;;  %v371_v3 = vld [vmem:[%s361_s29 + $0x18] sm:$0xff]  ;;  %v368_v4 = vld [vmem:[%s361_s29] sm:$0xff]  ;;  %s1139_s22 = sshll.u32 %s354_s25, 6  ;;  %s1658_s10 = scalar_lea.hbm %s1718_s9, %s1169_s24 }
  0x3d   : > { %v1170_v5 = vpack.c.bf16 %v371_v3, %v369_v2  ;;  %v370_v6 = vld [vmem:[%s361_s29 + $0x10] sm:$0xff]  ;;  %v377_v7 = vld [vmem:[%s366_s15 + $0x8] sm:$0xff]  ;;  %v379_v8 = vld [vmem:[%s366_s15 + $0x18] sm:$0xff]  ;;  %407 = vperm.xlu0 %1242, %v397_v16   ;;  %417 = vperm.xlu1 %1243, %v399_v18   ;;  %s356_s28 = scalar_lea.vmem [#allocation7], %s1139_s22  ;;  %p1729_p9 = scmp.ne.s32.totalorder %s1722_s20, 0 }
  0x3e   : > { %v1172_v9 = vpack.c.bf16 %v370_v6, %v368_v4  ;;  %v1174_v10 = vpack.c.bf16 %v379_v8, %v377_v7  ;;  %v376_v11 = vld [vmem:[%s366_s15] sm:$0xff]  ;;  %v378_v12 = vld [vmem:[%s366_s15 + $0x10] sm:$0xff]  ;;  %s1047_s29 = sshll.u32 %s356_s28, 4  ;;  %s1668_s15 = scalar_lea.sflag [#allocation6], %s354_s25  ;;  %s1660_s29 = int_to_ptr.vmem [resolvable:$true] %s1047_s29 }
  0x3f   : > { %1171 = vmatprep.subr.bf16.mxu0 %v1170_v5  ;;  %v1176_v13 = vpack.c.bf16 %v378_v12, %v376_v11  ;;  %v1244_v61 = vld [vmem:[%s1714_s5] sm:$0xff]   ;;  %s1287_s17 = scalar_lea.vmem %s1660_s29, 1024  ;;  %s1360_s18 = smov [#allocation7]  }
  0x40   : > { %1173 = vmatpush1.bf16.msra.mxu0 %v1172_v9  ;;  %p1288_p6 = scmp.ne.s32.totalorder %s1660_s29, %s1287_s17  ;;  %s1291_s23 = sshll.u32 %s1360_s18, 4  ;;  %s1292_s23 = int_to_ptr.vmem [resolvable:$false] %s1291_s23 }
  0x41   : > { %1175 = vmatprep.subr.bf16.mxu0 %v1174_v10  ;;  %548 = vperm.xlu0 %1242, %v540_v19   ;;  %s1293_s26 = scalar_lea.vmem %s1292_s23, 2048  ;;  %p1294_p2 = scmp.lt.s32.totalorder %s1660_s29, %s1292_s23 }
  0x42   : > { %553 = vperm.xlu1 %1243, %v541_v20   ;;  %p1289_p10 = pnand %p1288_p6, %p1729_p9  ;;  %p1295_p3 = scmp.lt.s32.totalorder %s1293_s26, %s1287_s17 }
  0x44   : > { %1177 = vmatpush1.bf16.msra.mxu0 %v1176_v13  ;;  %p1290_p12 = pneg %p1289_p10  ;;  %p1296_p4 = por %p1295_p3, %p1294_p2 }
  0x45   : > { %558 = vperm.xlu0 %1242, %v542_v22  }
  0x46   : > { %563 = vperm.xlu1 %1243, %v543_v23   ;;  %p1297_p7 = pnand %p1296_p4, %p1290_p12 }
  0x47   : > { %1144 = vmatmul.mubr.msk.f32.vlgmr.msra.gmra.mrb[0].mxu0 %vm420_vm0, %v384_v17 }
  0x48   : > { %503 = vmatprep.mubr.f32.mxu0 %v1358_v0 }
  0x49   : > { %568 = vperm.xlu0 %1242, %v544_v25  }
  0x4a   : > { %573 = vperm.xlu1 %1243, %v545_v26  }
  0x4b   : > { %1145 = vmatmul.mubr.msk.f32.gmra.mrb[2].mxu0 %vm420_vm0, %v385_v21 }
  0x4c   : > { %509 = vmatprep.mubr.f32.mxu0 %v1358_v0 }
  0x4d   : > { %768 = vperm.xlu0 %1242, %v765_v28  }
  0x4f   : > { %1146 = vmatmul.mubr.msk.f32.gmra.mrb[4].mxu0 %vm420_vm0, %v386_v24 }
  0x50   : > { %515 = vmatprep.mubr.f32.mxu0 %v1358_v0 }
  0x53   : > { %1147 = vmatmul.mubr.msk.f32.gmra.mrb[6].mxu0 %vm420_vm0, %v387_v27 }
  0x54   : > { %956 = vmatprep.mubr.f32.mxu0 %v1358_v0 }
  0xb8   : > { %v403_v29 = vpop.permute.xlu0 %402  ;;  %v413_v38 = vpop.permute.xlu1 %412 }
  0xbc   : > { %v408_v32 = vpop.permute.xlu0 %407  ;;  %v418_v48 = vpop.permute.xlu1 %417 }
  0xc0   : > { %v549_v2 = vpop.permute.xlu0 %548 }
  0xc1   : > { %v554_v14 = vpop.permute.xlu1 %553 }
  0xc4   : > { %v559_v16 = vpop.permute.xlu0 %558 }
 0x11a   : > { %v499_v30 = vpop.f32.mrb[0].mxu0 }
 0x11b   : > { %v501_v31 = vpop.f32.mrb[1].mxu0  ;;  %v500_v35 = vadd.f32 %v499_v30, %v403_v29 }
 0x11c   : > { %v502_v33 = vadd.f32 %v501_v31, %v403_v29 }
 0x11d   : > { %v1558_v44 = vmax.f32 %v500_v35, 0.0 }
 0x11e   : > { %v505_v34 = vpop.f32.mrb[2].mxu0  ;;  %v1554_v41 = vmax.f32 %v502_v33, 0.0 }
 0x11f   : > { %v506_v36 = vadd.f32 %v505_v34, %v408_v32  ;;  %v507_v37 = vpop.f32.mrb[3].mxu0  ;;  %v564_v34 = vpop.permute.xlu1 %563 }
 0x120   : > { %v508_v39 = vadd.f32 %v507_v37, %v408_v32 }
 0x121   : > { %v1552_v40 = vmax.f32 %v506_v36, 0.0  ;;  %v569_v36 = vpop.permute.xlu0 %568 }
 0x122   : > { %v1556_v42 = vmax.f32 %v508_v39, 0.0  ;;  %v511_v43 = vpop.f32.mrb[4].mxu0 }
 0x123   : > { %v513_v45 = vpop.f32.mrb[5].mxu0  ;;  %v1566_v47 = vpack.c.bf16 %v1552_v40, %v1558_v44  ;;  %v512_v51 = vadd.f32 %v511_v43, %v413_v38 }
 0x124   : > { %v1562_v46 = vpack.c.bf16 %v1556_v42, %v1554_v41  ;;  %v514_v49 = vadd.f32 %v513_v45, %v413_v38 }
 0x125   : > { %v1576_v58 = vmax.f32 %v512_v51, 0.0 }
 0x126   : > { %v517_v50 = vpop.f32.mrb[6].mxu0  ;;  %600 = vmatprep.subr.bf16.mxu1 %v1562_v46  ;;  %v1572_v56 = vmax.f32 %v514_v49, 0.0  ;;  %v682_v49 = vlaneseq }
 0x127   : > { %v518_v52 = vadd.f32 %v517_v50, %v418_v48  ;;  %v519_v53 = vpop.f32.mrb[7].mxu0  ;;  %601 = vmatpush1.bf16.msra.mxu1 %v1566_v47 }
 0x128   : > { %v520_v54 = vadd.f32 %v519_v53, %v418_v48 }
 0x129   : > { %v1570_v55 = vmax.f32 %v518_v52, 0.0 }
 0x12a   : > { %v1574_v57 = vmax.f32 %v520_v54, 0.0 }
 0x12b   : > { %v1584_v60 = vpack.c.bf16 %v1570_v55, %v1576_v58 }
 0x12c   : > { %v1580_v59 = vpack.c.bf16 %v1574_v57, %v1572_v56 }
 0x12e   : > { %602 = vmatprep.subr.bf16.mxu1 %v1580_v59 }
 0x12f   : > { %603 = vmatpush1.bf16.msra.mxu1 %v1584_v60 }
 0x132   : > { %1151 = vmatmul.mubr.msk.bf16.vlgmr.msra.gmra.mrb[0].mxu1 %vm420_vm0, %v1244_v61 }
 0x133   : > { %642 = vmatprep.mubr.bf16.mxu1 %v1359_v1 }
 0x13a   : > { %1152 = vmatmul.mubr.msk.bf16.gmra.mrb[4].mxu1 %vm420_vm0, %v1245_v62  ;;  %v574_v62 = vpop.permute.xlu1 %573 }
 0x13b   : > { %652 = vmatprep.mubr.bf16.mxu1 %v1359_v1 }
 0x142   : > { %1153 = vmatmul.mubr.msk.bf16.gmra.mrb[8].mxu1 %vm420_vm0, %v1246_v63  ;;  %v1608_v63 = vshrl.u32 %v682_v49, 7 }
 0x144   : > { %vm684_vm2 = vcmp.lt.s32.totalorder %v1608_v63, 4 }
 0x205   : > { %v634_v3 = vpop.f32.mrb[0].mxu1 }
 0x206   : > { %v1602_v4 = vadd.f32 %v634_v3, %v549_v2  ;;  %v636_v5 = vpop.f32.mrb[1].mxu1 }
 0x207   : > { %v637_v6 = vadd.f32 %v636_v5, %v549_v2  ;;  %v638_v7 = vpop.f32.mrb[2].mxu1 }
 0x208   : > { %v663_v8 = vmul.f32 %v1602_v4, %v1602_v4  ;;  %v640_v9 = vpop.f32.mrb[3].mxu1  ;;  %v639_v20 = vadd.f32 %v638_v7, %v554_v14 }
 0x209   : > { %v664_v10 = vmul.f32 %v637_v6, %v637_v6  ;;  %v641_v24 = vadd.f32 %v640_v9, %v554_v14 }
 0x20a   : > { %v666_v11 = vsel %vm665_vm1, %v663_v8, 0.0 }
 0x20b   : > { %v667_v12 = vrot.slane %v666_v11, 4  ;;  %v673_v13 = vsel %vm665_vm1, %v664_v10, 0.0 }
 0x20c   : > { %v674_v15 = vrot.slane %v673_v13, 4 }
 0x20d   : > { %v668_v17 = vadd.f32 %v667_v12, %v666_v11  ;;  %v644_v18 = vpop.f32.mrb[4].mxu1  ;;  %v764_v12 = vld [vmem:[%s1716_s7] sm:$0x7] }
 0x20e   : > { %v675_v19 = vadd.f32 %v674_v15, %v673_v13  ;;  %v645_v21 = vadd.f32 %v644_v18, %v559_v16  ;;  %v646_v22 = vpop.f32.mrb[5].mxu1 }
 0x20f   : > { %v669_v23 = vrot.slane %v668_v17, 2  ;;  %v647_v25 = vadd.f32 %v646_v22, %v559_v16  ;;  %v648_v26 = vpop.f32.mrb[6].mxu1 }
 0x210   : > { %v676_v27 = vrot.slane %v675_v19, 2  ;;  %v1180_v28 = vpack.c.bf16 %v645_v21, %v639_v20  ;;  %v650_v29 = vpop.f32.mrb[7].mxu1  ;;  %v649_v43 = vadd.f32 %v648_v26, %v564_v34 }
 0x211   : > { %v670_v30 = vadd.f32 %v669_v23, %v668_v17  ;;  %v1178_v31 = vpack.c.bf16 %v647_v25, %v641_v24  ;;  %v651_v50 = vadd.f32 %v650_v29, %v564_v34 }
 0x212   : > { %v677_v32 = vadd.f32 %v676_v27, %v675_v19 }
 0x213   : > { %v671_v33 = vrot.slane %v670_v30, 1  ;;  %1179 = vmatprep.subr.bf16.mxu1 %v1178_v31 }
 0x214   : > { %v678_v35 = vrot.slane %v677_v32, 1  ;;  %1181 = vmatpush1.bf16.xpose.msra.mxu1 %v1180_v28 }
 0x215   : > { %v672_v37 = vadd.f32 %v671_v33, %v670_v30  ;;  %v654_v38 = vpop.f32.mrb[8].mxu1 }
 0x216   : > { %v679_v39 = vadd.f32 %v678_v35, %v677_v32  ;;  %v655_v45 = vadd.f32 %v654_v38, %v569_v36  ;;  %v656_v48 = vpop.f32.mrb[9].mxu1 }
 0x217   : > { %1247 = vrsqrt.f32 %v672_v37  ;;  %v657_v51 = vadd.f32 %v656_v48, %v569_v36  ;;  %v658_v52 = vpop.f32.mrb[10].mxu1 }
 0x218   : > { %1249 = vrsqrt.f32 %v679_v39  ;;  %v1184_v53 = vpack.c.bf16 %v655_v45, %v649_v43  ;;  %v660_v54 = vpop.f32.mrb[11].mxu1  ;;  %v659_v8 = vadd.f32 %v658_v52, %v574_v62 }
 0x219   : > { %v1182_v61 = vpack.c.bf16 %v657_v51, %v651_v50  ;;  %v661_v2 = vadd.f32 %v660_v54, %v574_v62 }
 0x21b   : > { %1183 = vmatprep.subr.bf16.mxu1 %v1182_v61 }
 0x21c   : > { %1185 = vmatpush1.bf16.xpose.msra.mxu1 %v1184_v53 }
 0x21d   : > { %702 = vmatprep.subr.mxu1 %v661_v2 }
 0x221   : > { %v1248_v3 = vpop.eup %1247 }
 0x222   : > { %v1250_v5 = vpop.eup %1249  ;;  %v685_v7 = vsel %vm684_vm2, %v1248_v3, 1.0 }
 0x223   : > { %v686_v9 = vsel %vm684_vm2, %v1250_v5, 1.0  ;;  %v687_v11 = vmul.f32 %v685_v7, %v1602_v4 }
 0x224   : > { %v688_v10 = vmul.f32 %v686_v9, %v637_v6  ;;  %703 = vmatpush1.xpose.msra.mxu1 %v659_v8  ;;  %v690_v6 = vand.u32 127, %v682_v49  ;;  %v990_v8 = vstv %s987_s27 }
 0x225   : > { %774 = vmatprep.subr.bf16.mxu1 %v1562_v46 }
 0x226   : > { %758 = vmatprep.mubr.f32.mxu1 %v688_v10  ;;  %vm691_vm3 = vcmp.eq.s32.totalorder %v690_v6, 32 }
 0x227   : > { %759 = vmatmul.mubr.f32.vlgmr.msra.gmra.mrb[12].mxu1 %v687_v11  ;;  %vm692_vm4 = vmand %vm684_vm2, %vm691_vm3 }
 0x228   : > { %775 = vmatpush1.bf16.msra.mxu1 %v1566_v47  ;;  %806 = vmatprep.mubr.bf16.mxu1 %v1359_v1  ;;  %v693_v46 = vsel %vm692_vm4, 1e-06, %v1358_v0 }
 0x229   : > { %776 = vmatprep.subr.bf16.mxu1 %v1580_v59  ;;  %v769_v59 = vpop.permute.xlu0 %768 }
 0x22c   : > { %777 = vmatpush1.bf16.msra.mxu1 %v1584_v60 }
 0x22f   : > { %1154 = vmatmul.mubr.msk.bf16.vlgmr.msra.gmra.mrb[16].mxu1 %vm420_vm0, %v764_v12 }
 0x2fa   : > { %v760_v47 = vpop.f32.mrb[12].mxu1 }
 0x2fb   : > { %v761_v4 = vadd.f32 %v760_v47, %v693_v46  ;;  %v762_v1 = vpop.f32.mrb[13].mxu1 }
 0x2fd   : > { %837 = vxpose.xlu1.b32.start.end [1/1] (short) (narrow) %v761_v4, 40 }
 0x302   : > { %v808_v13 = vpop.f32.mrb[16].mxu1 }
 0x303   : > { %v809_v60 = vadd.f32 %v808_v13, %v769_v59  ;;  %v810_v14 = vpop.f32.mrb[17].mxu1 }
 0x304   : > { %v811_v15 = vadd.f32 %v810_v14, %v769_v59  ;;  %v812_v16 = vpop.f32.mrb[18].mxu1 }
 0x305   : > { %v815_v17 = vmul.f32 %v809_v60, %v809_v60  ;;  %v813_v18 = vpop.f32.mrb[19].mxu1 }
 0x306   : > { %v816_v19 = vmul.f32 %v811_v15, %v811_v15 }
 0x307   : > { %v817_v20 = vsel %vm665_vm1, %v815_v17, 0.0 }
 0x308   : > { %v818_v21 = vrot.slane %v817_v20, 4  ;;  %v824_v22 = vsel %vm665_vm1, %v816_v19, 0.0 }
 0x309   : > { %v825_v23 = vrot.slane %v824_v22, 4 }
 0x30a   : > { %v819_v24 = vadd.f32 %v818_v21, %v817_v20 }
 0x30b   : > { %v826_v25 = vadd.f32 %v825_v23, %v824_v22 }
 0x30c   : > { %v820_v26 = vrot.slane %v819_v24, 2 }
 0x30d   : > { %v827_v27 = vrot.slane %v826_v25, 2 }
 0x30e   : > { %v821_v28 = vadd.f32 %v820_v26, %v819_v24 }
 0x30f   : > { %v828_v29 = vadd.f32 %v827_v27, %v826_v25 }
 0x310   : > { %v822_v30 = vrot.slane %v821_v28, 1 }
 0x311   : > { %v829_v31 = vrot.slane %v828_v29, 1 }
 0x312   : > { %v823_v32 = vadd.f32 %v822_v30, %v821_v28 }
 0x313   : > { %v830_v33 = vadd.f32 %v829_v31, %v828_v29 }
 0x314   : > { %1251 = vrsqrt.f32 %v823_v32 }
 0x315   : > { %1253 = vrsqrt.f32 %v830_v33 }
 0x31e   : > { %v1252_v34 = vpop.eup %1251 }
 0x31f   : > { %v1254_v35 = vpop.eup %1253  ;;  %v833_v36 = vsel %vm684_vm2, %v1252_v34, 1.0 }
 0x320   : > { %v834_v37 = vsel %vm684_vm2, %v1254_v35, 1.0  ;;  %v835_v39 = vmul.f32 %v833_v36, %v809_v60 }
 0x321   : > { %v836_v38 = vmul.f32 %v834_v37, %v811_v15 }
 0x323   : > { %1155 = vmatprep.subr.msk.mxu0 %vm885_vm5, %v836_v38 }
 0x324   : > { %1156 = vmatpush1.msk.msra.mxu0 %vm885_vm5, %v835_v39 }
 0x37d   : > { %v853_v43 = vpop.trf.xlu1 }
 0x37e   : > { %1157 = vmatmul.mubr.msk.f32.vlgmr.msra.gmra.mrb[8].mxu0 %vm869_vm6, %v853_v43 }
 0x37f   : > { %962 = vmatprep.mubr.f32.mxu0 %v1358_v0 }
 0x381   : > { %v854_v45 = vpop.trf.xlu1 }
 0x382   : > { %1158 = vmatmul.mubr.msk.f32.gmra.mrb[10].mxu0 %vm869_vm6, %v854_v45 }
 0x383   : > { %968 = vmatprep.mubr.f32.mxu0 %v1358_v0 }
 0x385   : > { %v855_v48 = vpop.trf.xlu1 }
 0x386   : > { %1159 = vmatmul.mubr.msk.f32.gmra.mrb[12].mxu0 %vm869_vm6, %v855_v48 }
 0x387   : > { %974 = vmatprep.mubr.f32.mxu0 %v1358_v0 }
 0x389   : > { %v856_v49 = vpop.trf.xlu1 }
 0x38a   : > { %1160 = vmatmul.mubr.msk.f32.gmra.mrb[14].mxu0 %vm869_vm6, %v856_v49 }
 0x38b   : > { %980 = vmatprep.mubr.f32.mxu0 %v1358_v0  ;;  %v995_v0 = vsub.s32 0, %v1608_v63 }
 0x38d   : > { %v857_v50 = vpop.trf.xlu1 }
 0x38e   : > { %1161 = vmatmul.mubr.msk.f32.gmra.mrb[16].mxu0 %vm869_vm6, %v857_v50 }
 0x451   : > { %v958_v51 = vpop.f32.mrb[8].mxu0 }
 0x452   : > { %v960_v52 = vpop.f32.mrb[9].mxu0 }
 0x455   : > { %v964_v53 = vpop.f32.mrb[10].mxu0 }
 0x456   : > { %v966_v54 = vpop.f32.mrb[11].mxu0 }
 0x459   : > { %v970_v61 = vpop.f32.mrb[12].mxu0 }
 0x45a   : > { %v972_v62 = vpop.f32.mrb[13].mxu0 }
 0x45d   : > { %v976_v2 = vpop.f32.mrb[14].mxu0 }
 0x45e   : > { %v978_v3 = vpop.f32.mrb[15].mxu0 }
 0x461   : > { %v982_v5 = vpop.f32.mrb[16].mxu0 }
 0x462   : > { %1255 = vrcp.f32 %v982_v5  ;;  %v984_v7 = vpop.f32.mrb[17].mxu0 }
 0x463   : > { %1257 = vrcp.f32 %v984_v7 }
 0x46c   : > { %v1256_v9 = vpop.eup %1255 }
 0x46d   : > { %v1258_v10 = vpop.eup %1257  ;;  %v991_v11 = vmul.f32 %v1256_v9, %v990_v8 }
 0x46e   : > { %v992_v12 = vmul.f32 %v1258_v10, %v990_v8 }
 0x46f   : > { %v996_v6 = vrot.slane %v991_v11, %v995_v0 }
 0x470   : > { %v1000_v46 = vrot.slane %v992_v12, %v995_v0 }
 0x471   : > { %v1001_v47 = vmul.f32 %v996_v6, %v958_v51  ;;  %v1003_v4 = vmul.f32 %v996_v6, %v964_v53  ;;  %v1005_v1 = vmul.f32 %v996_v6, %v970_v61  ;;  %v1007_v59 = vmul.f32 %v996_v6, %v976_v2 }
 0x472   : > { %v1002_v13 = vmul.f32 %v1000_v46, %v960_v52  ;;  %v1004_v60 = vmul.f32 %v1000_v46, %v966_v54  ;;  %v1006_v14 = vmul.f32 %v1000_v46, %v972_v62  ;;  %v1008_v15 = vmul.f32 %v1000_v46, %v978_v3 }
 0x473   : > { %v1009_v63 = vmul.f32 %v1001_v47, %v1558_v44  ;;  %v1011_v16 = vmul.f32 %v1003_v4, %v1552_v40  ;;  %v1013_v17 = vmul.f32 %v1005_v1, %v1576_v58  ;;  %v1015_v18 = vmul.f32 %v1007_v59, %v1570_v55 }
 0x474   : > { %v1010_v19 = vmul.f32 %v1002_v13, %v1554_v41  ;;  %v1012_v20 = vmul.f32 %v1004_v60, %v1556_v42  ;;  %v1014_v21 = vmul.f32 %v1006_v14, %v1572_v56  ;;  %v1016_v22 = vmul.f32 %v1008_v15, %v1574_v57 }
 0x475   : > { %v1017_v23 = vadd.f32 %v1009_v63, %v1558_v44  ;;  %v1019_v24 = vadd.f32 %v1011_v16, %v1552_v40  ;;  %v1021_v25 = vadd.f32 %v1013_v17, %v1576_v58  ;;  %v1023_v26 = vadd.f32 %v1015_v18, %v1570_v55 }
 0x476   : > { %v1018_v27 = vadd.f32 %v1010_v19, %v1554_v41  ;;  %v1020_v44 = vadd.f32 %v1012_v20, %v1556_v42  ;;  %v1022_v40 = vadd.f32 %v1014_v21, %v1572_v56  ;;  %v1024_v58 = vadd.f32 %v1016_v22, %v1574_v57 }
 0x477   : > { %1025 = vst [vmem:[%s356_s28] sm:$0xff] %v1017_v23  ;;  %1027 = vst [vmem:[%s356_s28 + $0x10] sm:$0xff] %v1019_v24 }
 0x478   : > { %1029 = vst [vmem:[%s356_s28 + $0x20] sm:$0xff] %v1021_v25  ;;  %1031 = vst [vmem:[%s356_s28 + $0x30] sm:$0xff] %v1023_v26 }
 0x479   : > { %1026 = vst [vmem:[%s356_s28 + $0x8] sm:$0xff] %v1018_v27  ;;  %1028 = vst [vmem:[%s356_s28 + $0x18] sm:$0xff] %v1020_v44 }
 0x47a   : > { %1030 = vst [vmem:[%s356_s28 + $0x28] sm:$0xff] %v1022_v40  ;;  %1032 = vst [vmem:[%s356_s28 + $0x38] sm:$0xff] %v1024_v58 }
 0x47b   : > { %1300 = shalt.err (!%p1297_p7)
}
 0x47c   : > { %s1301_s27 = scalar_lea.hbm %s1658_s10, 1024  ;;  %s1305_s24 = scalar_lea.hbm %s1718_s9, 2048 }
 0x47d   : > { %p1302_p8 = scmp.ne.s32.totalorder %s1658_s10, %s1301_s27  ;;  %p1306_p1 = scmp.lt.u32.totalorder %s1658_s10, %s1718_s9 }
 0x47e   : > { %p1307_p0 = scmp.lt.u32.totalorder %s1305_s24, %s1301_s27  ;;  %p1309_p6 = scmp.lt.u32.totalorder %s1301_s27, %s1658_s10 }
 0x47f   : > { %p1303_p11 = pnand %p1302_p8, %p1729_p9 }
 0x480   : > { %p1308_p5 = por %p1307_p0, %p1306_p1 }
 0x481   : > { %p1304_p13 = pneg %p1303_p11 }
 0x482   : > { %p1310_p10 = por %p1309_p6, %p1308_p5 }
 0x484   : > { %p1311_p12 = pnand %p1310_p10, %p1304_p13 }
 0x486   : > { %1314 = shalt.err (!%p1311_p12)
}
 0x487   : > { %s1361_s30 = smov 256   ;;  %s1362_s17 = smov 16  }
 0x488   : > { %1190 = dma.vmem_to_hbm [thread:$0]  (%p1729_p9), %s1660_s29, 1024, %s1658_s10, %s1668_s15, %s1361_s30, %s1361_s30, %s1362_s17  }
 0x489 PF: > { %p1202_p2 = scmp.ge.s32.totalorder %s1353_s14, 2  ;;  %s1062_s18 = sand.u32 1, %s1341_s11  }
 0x48a   : > { %p1730_p3 = scmp.ne.s32.totalorder %s1723_s21, 0  ;;  %s1063_s23 = scalar_lea.sflag [#allocation6], %s1062_s18 }
 0x48c   : > { %p1197_p4 = pnand %p1202_p2, %p1730_p3 }
 0x48e   : > { %1336 = dma.done.wait (!%p1197_p4), %s1063_s23, 1024  }
 0x48f   : > { %1338 = vsyncadd (!%p1197_p4), %s1063_s23, 4294966272  ;;  %p21_p7 = scmp.ge.s32.totalorder %s1441_s16, 4   ;;  %s1731_s11 = smov %s1345_s12 }
 0x490   : > { %s1732_s12 = smov %s1349_s13  ;;  %s1733_s13 = smov %s1452_s19 }
 0x491   : > { %s1734_s14 = smov %s1441_s16  ;;  %23 = sbr.rel (!%p21_p7) target bundleno = 6 (0x6), region = 99 }
 0x498   :  { %1068 = vsyncpa [#allocation5], 1 }
 0x499   :  { %1070 = vsyncpa [#allocation5 + $0x1], 1 }
 0x49a   :  { %1071 = vsyncpa [#allocation6], 1 }
 0x49b   :  { %1073 = vsyncpa [#allocation6 + $0x1], 1 }

</bundles_post_ra>
